<compile_context>
chip_gen: v7x
topology: tpu7x:2x2x1
jax: 0.10.0
libtpu: 0.0.40
codegen_flags: <defaults>
</compile_context>

<pallas_src>
import functools

import numpy as np
import jax
import jax.numpy as jnp
from jax.experimental import pallas as pl
from jax.experimental.pallas import tpu as pltpu

K = 9          # Gaussian filter width (deterministic synthetic "parameter")
SIGMA = 3.0


def _gauss_1d(k, sigma):
    ax = np.arange(k, dtype=np.float64) - (k - 1) / 2.0
    g = np.exp(-(ax ** 2) / (2.0 * sigma ** 2))
    return (g / g.sum()).astype(np.float32)


def _banded_blur_matrix(n, g):
    """Symmetric banded matrix implementing a zero-padded 1-D conv with g."""
    k = g.shape[0]
    pad = k // 2
    b = np.zeros((n, n), np.float32)
    for i in range(n):
        for s in range(-pad, pad + 1):
            j = i + s
            if 0 <= j < n:
                b[i, j] = g[s + pad]
    return b


def _percentile_from_sorted(sorted_x, q):
    """np.percentile (linear interpolation) from an already-sorted last axis."""
    n = sorted_x.shape[-1]
    pos = q / 100.0 * (n - 1)
    lo = int(np.floor(pos))
    hi = int(np.ceil(pos))
    frac = pos - lo
    if lo == hi:
        return sorted_x[..., lo]
    return sorted_x[..., lo] * (1.0 - frac) + sorted_x[..., hi] * frac


def _vmem_limit_bytes():
    """~75% of physical VMEM (headroom for Mosaic internal scratch / sems)."""
    try:
        cap = int(pltpu.get_tpu_info().vmem_capacity_bytes)
    except Exception:            # info query unavailable -> conservative v7x
        cap = 64 * 1024 * 1024
    return max(min(cap * 3 // 4, 96 * 1024 * 1024), 16 * 1024 * 1024)


def _hfc_kernel(x_ref, mask_ref, med_ref, bh_ref, bv_ref, res_ref, *,
                do_median_padding, precision):
    """Median padding + separable Gaussian high-pass for one batch sample."""
    C, H, W = x_ref.shape[1], x_ref.shape[2], x_ref.shape[3]
    x = x_ref[0]             # (C, H, W) f32
    m = mask_ref[0, 0]       # (H, W)    f32, broadcast over channels
    if do_median_padding:
        med = med_ref[0]     # (C, 1, 1) per-(n,c) lower-median + 0.2
        # padding + mask*x  ==  mask*x + (1-mask)*(median + 0.2)
        x = m * x + (1.0 - m) * med

    mm_dtype = bh_ref.dtype          # bf16 by default, f32 accumulation
    xb = x.astype(mm_dtype)
    bh = bh_ref[...]                 # (W, W)
    bv = bv_ref[...]                 # (H, H)

    # Horizontal blur for all C channels in one MXU call when the (C, H) merge
    # is layout-free; otherwise a per-channel (static, unrolled) fallback.
    sub = 16 if mm_dtype == jnp.bfloat16 else 8
    if H % sub == 0:
        h = jnp.dot(xb.reshape(C * H, W), bh, precision=precision,
                    preferred_element_type=jnp.float32).reshape(C, H, W)
    else:
        h = jnp.stack([jnp.dot(xb[c], bh, precision=precision,
                               preferred_element_type=jnp.float32)
                       for c in range(C)])

    # Vertical blur + high-pass per channel (C is static -> unrolled loop).
    # TODO(synk): for H, W >= ~512 exploit the +-4 band structure of Bh/Bv
    # (block-banded matmul or 9x pltpu.roll + FMA) instead of dense (H,H)/(W,W)
    # contractions, and add a row-strip grid axis with a 4-row halo so the
    # per-step VMEM stays bounded on v7x (64 MiB physical VMEM).
    for c in range(C):
        blur_c = jnp.dot(bv, h[c].astype(mm_dtype), precision=precision,
                         preferred_element_type=jnp.float32)       # (H, W)
        # TODO(synk): get_hfc is abstract in the reference module; instantiated
        # as the canonical Gaussian high-pass (x - blur(x)) * mask.
        res_ref[0, c] = (x[c] - blur_c) * m


def _norm_kernel(res_ref, mask_ref, rmin_ref, inv_ref, out_ref, *, sub_mask):
    """Per-(n,c) percentile normalization (+ optional mask multiply)."""
    r = (res_ref[0] - rmin_ref[0]) * inv_ref[0]        # (C, HW)
    if sub_mask:
        r = r * mask_ref[0]                            # (1, HW) broadcast
    out_ref[0] = r


@functools.partial(
    jax.jit,
    static_argnames=("do_median_padding",
                     "normalization_percentile_threshold", "sub_mask",
                     "blur_in_bf16"))
def hfc_filter_forward(x, mask, *, do_median_padding=True,
                       normalization_percentile_threshold=3.0, sub_mask=True,
                       blur_in_bf16=True):
    N, C, H, W = x.shape
    assert mask.shape == (N, 1, H, W), "mask expected as (N, 1, H, W)"
    x = x.astype(jnp.float32)
    mask = mask.astype(jnp.float32)
    HW = H * W

    g1 = _gauss_1d(K, SIGMA)
    mm_dtype = jnp.bfloat16 if blur_in_bf16 else jnp.float32
    precision = None if blur_in_bf16 else jax.lax.Precision.HIGHEST
    bh = jnp.asarray(_banded_blur_matrix(W, g1)).astype(mm_dtype)   # (W, W)
    bv = jnp.asarray(_banded_blur_matrix(H, g1)).astype(mm_dtype)   # (H, H)

    # --- glue: torch-style lower median per (n, c), +0.2 (sort-based) ---
    # TODO(synk): sort-based order statistics (median / percentiles) have no
    # clean Pallas equivalent; they stay in plain JAX between the two kernels.
    # For realistic plane sizes a histogram/counting Pallas pass would be the
    # right replacement (the sorts dominate end-to-end wall time).
    if do_median_padding:
        med = jnp.sort(x.reshape(N, C, HW), axis=-1)[..., (HW - 1) // 2] + 0.2
    else:
        med = jnp.zeros((N, C), jnp.float32)
    med = med.reshape(N, C, 1, 1).astype(jnp.float32)

    cparams = pltpu.CompilerParams(
        dimension_semantics=("parallel",),        # batch axis; even N splits
        vmem_limit_bytes=_vmem_limit_bytes())     # across v7x's two TCs

    grid = (N,)
    x_spec = pl.BlockSpec((1, C, H, W), lambda n: (n, 0, 0, 0))
    mask_spec = pl.BlockSpec((1, 1, H, W), lambda n: (n, 0, 0, 0))
    med_spec = pl.BlockSpec((1, C, 1, 1), lambda n: (n, 0, 0, 0))
    # Constant-index blur matrices: single-buffered (no prefetch-ahead needed).
    bh_spec = pl.BlockSpec((W, W), lambda n: (0, 0), pipeline_mode=pl.Buffered(1))
    bv_spec = pl.BlockSpec((H, H), lambda n: (0, 0), pipeline_mode=pl.Buffered(1))

    # --- kernel 1: median padding + separable Gaussian high-pass ---
    res_raw = pl.pallas_call(
        functools.partial(_hfc_kernel, do_median_padding=do_median_padding,
                          precision=precision),
        out_shape=jax.ShapeDtypeStruct((N, C, H, W), jnp.float32),
        grid=grid,
        in_specs=[x_spec, mask_spec, med_spec, bh_spec, bv_spec],
        out_specs=x_spec,
        compiler_params=cparams,
    )(x, mask, med, bh, bv)

    # --- glue: both percentiles per (n, c) from ONE sort (numpy 'linear') ---
    # trunc(res*256)/256 (torch .int() truncates toward zero == f32->i32 cast)
    # is fused into the sort operand -- no `temp` round-trip through HBM.
    # (Matches the PyTorch in-place loop: slice (n, c) is still unmodified when
    #  its own percentiles are taken.)
    q = float(normalization_percentile_threshold)
    res_flat = res_raw.reshape(N, C, HW)
    temp = (res_flat * 256.0).astype(jnp.int32).astype(jnp.float32) * (1.0 / 256.0)
    sorted_t = jnp.sort(temp, axis=-1)
    rmin = _percentile_from_sorted(sorted_t, q)
    rmax = _percentile_from_sorted(sorted_t, 100.0 - q)
    # NOTE: like the PyTorch reference, no guard against rmax == rmin.
    inv = 1.0 / (rmax - rmin)
    rmin = rmin.reshape(N, C, 1).astype(jnp.float32)
    inv = inv.reshape(N, C, 1).astype(jnp.float32)

    # --- kernel 2: lane-dense per-(n,c) normalization (+ sub_mask multiply) ---
    # TODO(synk): for very large H*W add a second grid axis over H*W chunks so
    # the (1, C, H*W) slab stays well under the VMEM limit.
    mask_flat = mask.reshape(N, 1, HW)
    slab_spec = pl.BlockSpec((1, C, HW), lambda n: (n, 0, 0))
    mflat_spec = pl.BlockSpec((1, 1, HW), lambda n: (n, 0, 0))
    scal_spec = pl.BlockSpec((1, C, 1), lambda n: (n, 0, 0))
    out = pl.pallas_call(
        functools.partial(_norm_kernel, sub_mask=sub_mask),
        out_shape=jax.ShapeDtypeStruct((N, C, HW), jnp.float32),
        grid=grid,
        in_specs=[slab_spec, mflat_spec, scal_spec, scal_spec],
        out_specs=slab_spec,
        compiler_params=cparams,
        input_output_aliases={0: 0},     # write the result over res in place
    )(res_flat, mask_flat, rmin, inv)
    return out.reshape(N, C, H, W)


if __name__ == "__main__":
    key = jax.random.PRNGKey(0)
    kx, km = jax.random.split(key)
    N, C, H, W = 2, 4, 16, 16
    x = jax.random.normal(kx, (N, C, H, W), dtype=jnp.float32)
    mask = (jax.random.uniform(km, (N, 1, H, W)) > 0.3).astype(jnp.float32)

    out = hfc_filter_forward(x, mask)
    jax.block_until_ready(out)
    assert out.shape == (N, C, H, W)
    print("KERNEL_OK")
</pallas_src>

<mosaic_0001>
module attributes {stable_mosaic.version = 11 : i64} {
  func.func @_hfc_kernel(%arg0: i32, %arg1: memref<1x4x16x16xf32, #tpu.memory_space<vmem>>, %arg2: memref<1x1x16x16xf32, #tpu.memory_space<vmem>>, %arg3: memref<1x4x1x1xf32, #tpu.memory_space<vmem>>, %arg4: memref<16x16xbf16, #tpu.memory_space<vmem>>, %arg5: memref<16x16xbf16, #tpu.memory_space<vmem>>, %arg6: memref<1x4x16x16xf32, #tpu.memory_space<vmem>>) attributes {dimension_semantics = [#tpu.dimension_semantics<parallel>], iteration_bounds = array<i64: 2>, scalar_prefetch = 0 : i64, scratch_operands = 0 : i64, tpu.core_type = #tpu.core_type<tc>, window_params = [{transform_indices = @transform_0, window_bounds = array<i64: 1, 4, 16, 16>}, {transform_indices = @transform_1, window_bounds = array<i64: 1, 1, 16, 16>}, {transform_indices = @transform_2, window_bounds = array<i64: 1, 4, 1, 1>}, {pipeline_mode = #tpu.pipeline_mode<synchronous>, transform_indices = @transform_3, window_bounds = array<i64: 16, 16>}, {pipeline_mode = #tpu.pipeline_mode<synchronous>, transform_indices = @transform_4, window_bounds = array<i64: 16, 16>}, {transform_indices = @transform_5, window_bounds = array<i64: 1, 4, 16, 16>}]} {
    %c0 = arith.constant 0 : index
    %c0_0 = arith.constant 0 : index
    %c0_1 = arith.constant 0 : index
    %c0_2 = arith.constant 0 : index
    %0 = vector.load %arg1[%c0, %c0_0, %c0_1, %c0_2] : memref<1x4x16x16xf32, #tpu.memory_space<vmem>>, vector<1x4x16x16xf32>
    %1 = vector.shape_cast %0 : vector<1x4x16x16xf32> to vector<4x16x16xf32>
    %c0_3 = arith.constant 0 : index
    %c0_4 = arith.constant 0 : index
    %c0_5 = arith.constant 0 : index
    %c0_6 = arith.constant 0 : index
    %2 = vector.load %arg2[%c0_3, %c0_4, %c0_5, %c0_6] : memref<1x1x16x16xf32, #tpu.memory_space<vmem>>, vector<1x1x16x16xf32>
    %3 = vector.shape_cast %2 : vector<1x1x16x16xf32> to vector<16x16xf32>
    %c0_7 = arith.constant 0 : index
    %c0_8 = arith.constant 0 : index
    %c0_9 = arith.constant 0 : index
    %c0_10 = arith.constant 0 : index
    %4 = vector.load %arg3[%c0_7, %c0_8, %c0_9, %c0_10] : memref<1x4x1x1xf32, #tpu.memory_space<vmem>>, vector<1x4x1x1xf32>
    %5 = vector.shape_cast %4 : vector<1x4x1x1xf32> to vector<4x1x1xf32>
    %6 = vector.shape_cast %3 : vector<16x16xf32> to vector<1x16x16xf32>
    %7 = vector.broadcast %6 : vector<1x16x16xf32> to vector<4x16x16xf32>
    %8 = arith.mulf %7, %1 : vector<4x16x16xf32>
    %cst = arith.constant 1.000000e+00 : f32
    %9 = vector.broadcast %cst : f32 to vector<16x16xf32>
    %10 = arith.subf %9, %3 : vector<16x16xf32>
    %11 = vector.shape_cast %10 : vector<16x16xf32> to vector<1x16x16xf32>
    %12 = vector.broadcast %11 : vector<1x16x16xf32> to vector<4x16x16xf32>
    %13 = vector.broadcast %5 : vector<4x1x1xf32> to vector<4x16x16xf32>
    %14 = arith.mulf %12, %13 : vector<4x16x16xf32>
    %15 = arith.addf %8, %14 : vector<4x16x16xf32>
    %16 = arith.truncf %15 : vector<4x16x16xf32> to vector<4x16x16xbf16>
    %c0_11 = arith.constant 0 : index
    %c0_12 = arith.constant 0 : index
    %17 = vector.load %arg4[%c0_11, %c0_12] : memref<16x16xbf16, #tpu.memory_space<vmem>>, vector<16x16xbf16>
    %c0_13 = arith.constant 0 : index
    %c0_14 = arith.constant 0 : index
    %18 = vector.load %arg5[%c0_13, %c0_14] : memref<16x16xbf16, #tpu.memory_space<vmem>>, vector<16x16xbf16>
    %19 = vector.shape_cast %16 : vector<4x16x16xbf16> to vector<64x16xbf16>
    %cst_15 = arith.constant dense<0.000000e+00> : vector<64x16xf32>
    %20 = tpu.matmul %19, %17, %cst_15 {dimension_numbers = #tpu.dot_dimension_numbers<[1], [0], [0], [1], [0, 0, 1, 1], [], []>} : vector<64x16xbf16>, vector<16x16xbf16>, vector<64x16xf32> -> vector<64x16xf32>
    %21 = vector.shape_cast %20 : vector<64x16xf32> to vector<4x16x16xf32>
    %22 = vector.extract_strided_slice %21 {offsets = [0, 0, 0], sizes = [1, 16, 16], strides = [1, 1, 1]} : vector<4x16x16xf32> to vector<1x16x16xf32>
    %23 = vector.shape_cast %22 : vector<1x16x16xf32> to vector<16x16xf32>
    %24 = arith.truncf %23 : vector<16x16xf32> to vector<16x16xbf16>
    %cst_16 = arith.constant dense<0.000000e+00> : vector<16x16xf32>
    %25 = tpu.matmul %18, %24, %cst_16 {dimension_numbers = #tpu.dot_dimension_numbers<[1], [0], [0], [1], [0, 0, 1, 1], [], []>} : vector<16x16xbf16>, vector<16x16xbf16>, vector<16x16xf32> -> vector<16x16xf32>
    %26 = vector.extract_strided_slice %15 {offsets = [0, 0, 0], sizes = [1, 16, 16], strides = [1, 1, 1]} : vector<4x16x16xf32> to vector<1x16x16xf32>
    %27 = vector.shape_cast %26 : vector<1x16x16xf32> to vector<16x16xf32>
    %28 = arith.subf %27, %25 : vector<16x16xf32>
    %29 = arith.mulf %28, %3 : vector<16x16xf32>
    %c0_17 = arith.constant 0 : index
    %c0_18 = arith.constant 0 : index
    %c0_19 = arith.constant 0 : index
    %c0_20 = arith.constant 0 : index
    %30 = vector.load %arg6[%c0_17, %c0_18, %c0_19, %c0_20] : memref<1x4x16x16xf32, #tpu.memory_space<vmem>>, vector<1x1x16x16xf32>
    %31 = vector.shape_cast %30 : vector<1x1x16x16xf32> to vector<16x16xf32>
    %32 = vector.shape_cast %29 : vector<16x16xf32> to vector<1x1x16x16xf32>
    tpu.vector_store %arg6[%c0_17, %c0_18, %c0_19, %c0_20], %32 {strides = array<i32>} : memref<1x4x16x16xf32, #tpu.memory_space<vmem>>, vector<1x1x16x16xf32>,
    %33 = vector.extract_strided_slice %21 {offsets = [1, 0, 0], sizes = [1, 16, 16], strides = [1, 1, 1]} : vector<4x16x16xf32> to vector<1x16x16xf32>
    %34 = vector.shape_cast %33 : vector<1x16x16xf32> to vector<16x16xf32>
    %35 = arith.truncf %34 : vector<16x16xf32> to vector<16x16xbf16>
    %cst_21 = arith.constant dense<0.000000e+00> : vector<16x16xf32>
    %36 = tpu.matmul %18, %35, %cst_21 {dimension_numbers = #tpu.dot_dimension_numbers<[1], [0], [0], [1], [0, 0, 1, 1], [], []>} : vector<16x16xbf16>, vector<16x16xbf16>, vector<16x16xf32> -> vector<16x16xf32>
    %37 = vector.extract_strided_slice %15 {offsets = [1, 0, 0], sizes = [1, 16, 16], strides = [1, 1, 1]} : vector<4x16x16xf32> to vector<1x16x16xf32>
    %38 = vector.shape_cast %37 : vector<1x16x16xf32> to vector<16x16xf32>
    %39 = arith.subf %38, %36 : vector<16x16xf32>
    %40 = arith.mulf %39, %3 : vector<16x16xf32>
    %c0_22 = arith.constant 0 : index
    %c1 = arith.constant 1 : index
    %c0_23 = arith.constant 0 : index
    %c0_24 = arith.constant 0 : index
    %41 = vector.load %arg6[%c0_22, %c1, %c0_23, %c0_24] : memref<1x4x16x16xf32, #tpu.memory_space<vmem>>, vector<1x1x16x16xf32>
    %42 = vector.shape_cast %41 : vector<1x1x16x16xf32> to vector<16x16xf32>
    %43 = vector.shape_cast %40 : vector<16x16xf32> to vector<1x1x16x16xf32>
    tpu.vector_store %arg6[%c0_22, %c1, %c0_23, %c0_24], %43 {strides = array<i32>} : memref<1x4x16x16xf32, #tpu.memory_space<vmem>>, vector<1x1x16x16xf32>,
    %44 = vector.extract_strided_slice %21 {offsets = [2, 0, 0], sizes = [1, 16, 16], strides = [1, 1, 1]} : vector<4x16x16xf32> to vector<1x16x16xf32>
    %45 = vector.shape_cast %44 : vector<1x16x16xf32> to vector<16x16xf32>
    %46 = arith.truncf %45 : vector<16x16xf32> to vector<16x16xbf16>
    %cst_25 = arith.constant dense<0.000000e+00> : vector<16x16xf32>
    %47 = tpu.matmul %18, %46, %cst_25 {dimension_numbers = #tpu.dot_dimension_numbers<[1], [0], [0], [1], [0, 0, 1, 1], [], []>} : vector<16x16xbf16>, vector<16x16xbf16>, vector<16x16xf32> -> vector<16x16xf32>
    %48 = vector.extract_strided_slice %15 {offsets = [2, 0, 0], sizes = [1, 16, 16], strides = [1, 1, 1]} : vector<4x16x16xf32> to vector<1x16x16xf32>
    %49 = vector.shape_cast %48 : vector<1x16x16xf32> to vector<16x16xf32>
    %50 = arith.subf %49, %47 : vector<16x16xf32>
    %51 = arith.mulf %50, %3 : vector<16x16xf32>
    %c0_26 = arith.constant 0 : index
    %c2 = arith.constant 2 : index
    %c0_27 = arith.constant 0 : index
    %c0_28 = arith.constant 0 : index
    %52 = vector.load %arg6[%c0_26, %c2, %c0_27, %c0_28] : memref<1x4x16x16xf32, #tpu.memory_space<vmem>>, vector<1x1x16x16xf32>
    %53 = vector.shape_cast %52 : vector<1x1x16x16xf32> to vector<16x16xf32>
    %54 = vector.shape_cast %51 : vector<16x16xf32> to vector<1x1x16x16xf32>
    tpu.vector_store %arg6[%c0_26, %c2, %c0_27, %c0_28], %54 {strides = array<i32>} : memref<1x4x16x16xf32, #tpu.memory_space<vmem>>, vector<1x1x16x16xf32>,
    %55 = vector.extract_strided_slice %21 {offsets = [3, 0, 0], sizes = [1, 16, 16], strides = [1, 1, 1]} : vector<4x16x16xf32> to vector<1x16x16xf32>
    %56 = vector.shape_cast %55 : vector<1x16x16xf32> to vector<16x16xf32>
    %57 = arith.truncf %56 : vector<16x16xf32> to vector<16x16xbf16>
    %cst_29 = arith.constant dense<0.000000e+00> : vector<16x16xf32>
    %58 = tpu.matmul %18, %57, %cst_29 {dimension_numbers = #tpu.dot_dimension_numbers<[1], [0], [0], [1], [0, 0, 1, 1], [], []>} : vector<16x16xbf16>, vector<16x16xbf16>, vector<16x16xf32> -> vector<16x16xf32>
    %59 = vector.extract_strided_slice %15 {offsets = [3, 0, 0], sizes = [1, 16, 16], strides = [1, 1, 1]} : vector<4x16x16xf32> to vector<1x16x16xf32>
    %60 = vector.shape_cast %59 : vector<1x16x16xf32> to vector<16x16xf32>
    %61 = arith.subf %60, %58 : vector<16x16xf32>
    %62 = arith.mulf %61, %3 : vector<16x16xf32>
    %c0_30 = arith.constant 0 : index
    %c3 = arith.constant 3 : index
    %c0_31 = arith.constant 0 : index
    %c0_32 = arith.constant 0 : index
    %63 = vector.load %arg6[%c0_30, %c3, %c0_31, %c0_32] : memref<1x4x16x16xf32, #tpu.memory_space<vmem>>, vector<1x1x16x16xf32>
    %64 = vector.shape_cast %63 : vector<1x1x16x16xf32> to vector<16x16xf32>
    %65 = vector.shape_cast %62 : vector<16x16xf32> to vector<1x1x16x16xf32>
    tpu.vector_store %arg6[%c0_30, %c3, %c0_31, %c0_32], %65 {strides = array<i32>} : memref<1x4x16x16xf32, #tpu.memory_space<vmem>>, vector<1x1x16x16xf32>,
    return
  }
  func.func @transform_0(%arg0: i32) -> (i32, i32, i32, i32) {
    %c0_i32 = arith.constant 0 : i32
    %c0_i32_0 = arith.constant 0 : i32
    %c0_i32_1 = arith.constant 0 : i32
    %c0_i32_2 = arith.constant 0 : i32
    return %arg0, %c0_i32, %c0_i32_0, %c0_i32_1 : i32, i32, i32, i32
  }
  func.func @transform_1(%arg0: i32) -> (i32, i32, i32, i32) {
    %c0_i32 = arith.constant 0 : i32
    %c0_i32_0 = arith.constant 0 : i32
    %c0_i32_1 = arith.constant 0 : i32
    %c0_i32_2 = arith.constant 0 : i32
    return %arg0, %c0_i32, %c0_i32_0, %c0_i32_1 : i32, i32, i32, i32
  }
  func.func @transform_2(%arg0: i32) -> (i32, i32, i32, i32) {
    %c0_i32 = arith.constant 0 : i32
    %c0_i32_0 = arith.constant 0 : i32
    %c0_i32_1 = arith.constant 0 : i32
    %c0_i32_2 = arith.constant 0 : i32
    return %arg0, %c0_i32, %c0_i32_0, %c0_i32_1 : i32, i32, i32, i32
  }
  func.func @transform_3(%arg0: i32) -> (i32, i32) {
    %c0_i32 = arith.constant 0 : i32
    %c0_i32_0 = arith.constant 0 : i32
    %c0_i32_1 = arith.constant 0 : i32
    return %c0_i32, %c0_i32_0 : i32, i32
  }
  func.func @transform_4(%arg0: i32) -> (i32, i32) {
    %c0_i32 = arith.constant 0 : i32
    %c0_i32_0 = arith.constant 0 : i32
    %c0_i32_1 = arith.constant 0 : i32
    return %c0_i32, %c0_i32_0 : i32, i32
  }
  func.func @transform_5(%arg0: i32) -> (i32, i32, i32, i32) {
    %c0_i32 = arith.constant 0 : i32
    %c0_i32_0 = arith.constant 0 : i32
    %c0_i32_1 = arith.constant 0 : i32
    %c0_i32_2 = arith.constant 0 : i32
    return %arg0, %c0_i32, %c0_i32_0, %c0_i32_1 : i32, i32, i32, i32
  }
}

module attributes {stable_mosaic.version = 11 : i64} {
  func.func @_norm_kernel(%arg0: i32, %arg1: memref<1x4x256xf32, #tpu.memory_space<vmem>>, %arg2: memref<1x1x256xf32, #tpu.memory_space<vmem>>, %arg3: memref<1x4x1xf32, #tpu.memory_space<vmem>>, %arg4: memref<1x4x1xf32, #tpu.memory_space<vmem>>, %arg5: memref<1x4x256xf32, #tpu.memory_space<vmem>>) attributes {dimension_semantics = [#tpu.dimension_semantics<parallel>], iteration_bounds = array<i64: 2>, scalar_prefetch = 0 : i64, scratch_operands = 0 : i64, tpu.core_type = #tpu.core_type<tc>, window_params = [{transform_indices = @transform_0, window_bounds = array<i64: 1, 4, 256>}, {transform_indices = @transform_1, window_bounds = array<i64: 1, 1, 256>}, {transform_indices = @transform_2, window_bounds = array<i64: 1, 4, 1>}, {transform_indices = @transform_3, window_bounds = array<i64: 1, 4, 1>}, {transform_indices = @transform_4, window_bounds = array<i64: 1, 4, 256>}]} {
    %c0 = arith.constant 0 : index
    %c0_0 = arith.constant 0 : index
    %c0_1 = arith.constant 0 : index
    %0 = vector.load %arg1[%c0, %c0_0, %c0_1] : memref<1x4x256xf32, #tpu.memory_space<vmem>>, vector<1x4x256xf32>
    %1 = vector.shape_cast %0 : vector<1x4x256xf32> to vector<4x256xf32>
    %c0_2 = arith.constant 0 : index
    %c0_3 = arith.constant 0 : index
    %c0_4 = arith.constant 0 : index
    %2 = vector.load %arg3[%c0_2, %c0_3, %c0_4] : memref<1x4x1xf32, #tpu.memory_space<vmem>>, vector<1x4x1xf32>
    %3 = vector.shape_cast %2 : vector<1x4x1xf32> to vector<4x1xf32>
    %4 = vector.broadcast %3 : vector<4x1xf32> to vector<4x256xf32>
    %5 = arith.subf %1, %4 : vector<4x256xf32>
    %c0_5 = arith.constant 0 : index
    %c0_6 = arith.constant 0 : index
    %c0_7 = arith.constant 0 : index
    %6 = vector.load %arg4[%c0_5, %c0_6, %c0_7] : memref<1x4x1xf32, #tpu.memory_space<vmem>>, vector<1x4x1xf32>
    %7 = vector.shape_cast %6 : vector<1x4x1xf32> to vector<4x1xf32>
    %8 = vector.broadcast %7 : vector<4x1xf32> to vector<4x256xf32>
    %9 = arith.mulf %5, %8 : vector<4x256xf32>
    %c0_8 = arith.constant 0 : index
    %c0_9 = arith.constant 0 : index
    %c0_10 = arith.constant 0 : index
    %10 = vector.load %arg2[%c0_8, %c0_9, %c0_10] : memref<1x1x256xf32, #tpu.memory_space<vmem>>, vector<1x1x256xf32>
    %11 = vector.shape_cast %10 : vector<1x1x256xf32> to vector<1x256xf32>
    %12 = vector.broadcast %11 : vector<1x256xf32> to vector<4x256xf32>
    %13 = arith.mulf %9, %12 : vector<4x256xf32>
    %c0_11 = arith.constant 0 : index
    %c0_12 = arith.constant 0 : index
    %c0_13 = arith.constant 0 : index
    %14 = vector.load %arg5[%c0_11, %c0_12, %c0_13] : memref<1x4x256xf32, #tpu.memory_space<vmem>>, vector<1x4x256xf32>
    %15 = vector.shape_cast %14 : vector<1x4x256xf32> to vector<4x256xf32>
    %16 = vector.shape_cast %13 : vector<4x256xf32> to vector<1x4x256xf32>
    tpu.vector_store %arg5[%c0_11, %c0_12, %c0_13], %16 {strides = array<i32>} : memref<1x4x256xf32, #tpu.memory_space<vmem>>, vector<1x4x256xf32>,
    return
  }
  func.func @transform_0(%arg0: i32) -> (i32, i32, i32) {
    %c0_i32 = arith.constant 0 : i32
    %c0_i32_0 = arith.constant 0 : i32
    %c0_i32_1 = arith.constant 0 : i32
    return %arg0, %c0_i32, %c0_i32_0 : i32, i32, i32
  }
  func.func @transform_1(%arg0: i32) -> (i32, i32, i32) {
    %c0_i32 = arith.constant 0 : i32
    %c0_i32_0 = arith.constant 0 : i32
    %c0_i32_1 = arith.constant 0 : i32
    return %arg0, %c0_i32, %c0_i32_0 : i32, i32, i32
  }
  func.func @transform_2(%arg0: i32) -> (i32, i32, i32) {
    %c0_i32 = arith.constant 0 : i32
    %c0_i32_0 = arith.constant 0 : i32
    %c0_i32_1 = arith.constant 0 : i32
    return %arg0, %c0_i32, %c0_i32_0 : i32, i32, i32
  }
  func.func @transform_3(%arg0: i32) -> (i32, i32, i32) {
    %c0_i32 = arith.constant 0 : i32
    %c0_i32_0 = arith.constant 0 : i32
    %c0_i32_1 = arith.constant 0 : i32
    return %arg0, %c0_i32, %c0_i32_0 : i32, i32, i32
  }
  func.func @transform_4(%arg0: i32) -> (i32, i32, i32) {
    %c0_i32 = arith.constant 0 : i32
    %c0_i32_0 = arith.constant 0 : i32
    %c0_i32_1 = arith.constant 0 : i32
    return %arg0, %c0_i32, %c0_i32_0 : i32, i32, i32
  }
}

</mosaic_0001>

<bundles_post_ra>
// kernel: hfc_filter_forward.3
= control target key start
LH: loop header
LB: loop body
LE: loop exit
PB: predicated region body
PF: predicated region fallthrough
CT: control target
= control target key end

     0   :  { %s445_s15 = smov 0   ;;  %s476_s0 = inlined_call_operand.vmem [shape: f32[2,4,256], index: 0, kind: input, shape index: {}, may-alias: {0,4}]   ;;  %s477_s1 = inlined_call_operand.vmem [shape: f32[2,1,256], index: 1, kind: input, shape index: {}]   ;;  %s478_s2 = inlined_call_operand.vmem [shape: f32[2,4,1], index: 2, kind: input, shape index: {}]   ;;  %s479_s3 = inlined_call_operand.vmem [shape: f32[2,4,1], index: 3, kind: input, shape index: {}]   ;;  %s480_s4 = inlined_call_operand.vmem [shape: f32[2,4,256], index: 4, kind: output, shape index: {}, may-alias: {0,4}]  }
   0x1 LB: > { %s383_s16 = sadd.s32 4294967295, %s416_s15   ;;  %p387_p0 = scmp.ge.s32.totalorder %s416_s15, 1  ;;  %s416_s15 = sphi %s445_s15, %s14_s15  }
   0x2   : > { %p189_p1 = scmp.lt.s32.totalorder %s416_s15, 3 }
   0x4   : > { %p190_p2 = pnand %p387_p0, %p189_p1 }
   0x5   : > { %p227_p3 = scmp.lt.s32.totalorder (!%p190_p2), %s383_s16, 1  ;;  %v418_v0 = vmov (!%p190_p2), 0   ;;  %v419_v3 = vmov (!%p190_p2), 839922192   ;;  %v258_v5 = vlaneseq (!%p190_p2) }
   0x6   : > { %193 = sbr.rel (%p190_p2) target bundleno = 156 (0x9c), region = 36  ;;  %409 = vset.pattern.permute.xlu0 (!%p190_p2), %v418_v0  ;;  %v256_v4 = vunpack.c.l.s4 (!%p190_p2), %v419_v3 }
   0x7   : > { %v259_v7 = vshrl.u32 (!%p190_p2), %v258_v5, 7 }
   0x8   : > { %v257_v6 = vunpack.c.0.s8 (!%p190_p2), %v256_v4 }
   0x9   : > { %v282_v9 = vsub.s32 (!%p190_p2), 0, %v259_v7  ;;  %v286_v10 = vsub.s32 (!%p190_p2), 1, %v259_v7 }
   0xa   : > { %v260_v8 = vsub.s32 (!%p190_p2), %v257_v6, %v259_v7 }
   0xd   : > { %s482_s16 = smov (!%p227_p3, %s383_s16), 1 }
   0xe   : > { %s391_s17 = sshll.u32 %s482_s16, 2  ;;  %s390_s24 = sshll.u32 %s482_s16, 1 }
   0xf   : > { %s239_s20 = scalar_lea.vmem %s478_s2, %s391_s17  ;;  %s243_s23 = scalar_lea.vmem %s479_s3, %s391_s17 }
  0x10   : > { %v250_v1 = vld [vmem:[%s239_s20] sm:$0xf]  ;;  %s235_s27 = scalar_lea.vmem %s477_s1, %s390_s24  ;;  %s397_s28 = sshll.u32 %s482_s16, 3 }
  0x11   : > { %253 = vperm.xlu0 %409, %v250_v1   ;;  %v264_v2 = vld [vmem:[%s243_s23] sm:$0xf]  ;;  %s231_s5 = scalar_lea.vmem %s476_s0, %s397_s28  ;;  %s248_s8 = scalar_lea.vmem %s480_s4, %s397_s28 }
  0x12   : > { %v278_v11 = vld [vmem:[%s235_s27] sm:$0x3] }
  0x13   : > { %v283_v14 = vrot.slane %v278_v11, %v282_v9  ;;  %v287_v15 = vrot.slane %v278_v11, %v286_v10  ;;  %v249_v16 = vld [vmem:[%s231_s5] sm:$0xff] }
  0x15   : > { %267 = vperm.xlu0 %409, %v264_v2   ;;  %v288_v20 = vcombine.low %v283_v14, %v287_v15 }
  0x90   : > { %v254_v12 = vpop.permute.xlu0 %253 }
  0x91   : > { %v261_v13 = vrot.slane %v254_v12, %v260_v8 }
  0x93   : > { %v263_v18 = vsub.f32 %v249_v16, %v261_v13 }
  0x94   : > { %v268_v17 = vpop.permute.xlu0 %267 }
  0x95   : > { %v275_v19 = vrot.slane %v268_v17, %v260_v8 }
  0x97   : > { %v277_v21 = vmul.f32 %v275_v19, %v263_v18 }
  0x99   : > { %v290_v22 = vmul.f32 %v288_v20, %v277_v21 }
  0x9b   : > { %291 = vst [vmem:[%s248_s8] sm:$0xff] %v290_v22 }
  0x9c PF: > { %s14_s15 = sadd.s32 1, %s416_s15  }
  0x9d   : > { %p11_p4 = scmp.ge.s32.totalorder %s14_s15, 4  }
  0x9f   :  { %13 = sbr.rel (!%p11_p4) target bundleno = 1 (0x1), region = 75 }

// kernel: hfc_filter_forward.2
= control target key start
LH: loop header
LB: loop body
LE: loop exit
PB: predicated region body
PF: predicated region fallthrough
CT: control target
= control target key end

     0   :  { %s853_s18 = smov 0   ;;  %s975_s0 = inlined_call_operand.vmem [shape: f32[2,4,16,16], index: 0, kind: input, shape index: {}]   ;;  %s976_s1 = inlined_call_operand.vmem [shape: f32[2,1,16,16], index: 1, kind: input, shape index: {}]   ;;  %s977_s2 = inlined_call_operand.vmem [shape: f32[2,4,1,1], index: 2, kind: input, shape index: {}]   ;;  %s978_s3 = inlined_call_operand.vmem [shape: bf16[16,16], index: 3, kind: input, shape index: {}, may-alias: {3,4}]   ;;  %s979_s4 = inlined_call_operand.vmem [shape: bf16[16,16], index: 4, kind: input, shape index: {}, may-alias: {3,4}]   ;;  %s980_s5 = inlined_call_operand.vmem [shape: f32[2,4,16,16], index: 5, kind: output, shape index: {}]  }
   0x1 LB: > { %s713_s19 = sadd.s32 4294967295, %s818_s18   ;;  %p717_p0 = scmp.ge.s32.totalorder %s818_s18, 1  ;;  %s818_s18 = sphi %s853_s18, %s15_s18  }
   0x2   : > { %p206_p1 = scmp.lt.s32.totalorder %s818_s18, 3 }
   0x4   : > { %p207_p2 = pnand %p717_p0, %p206_p1 }
   0x5   : > { %p243_p3 = scmp.lt.s32.totalorder (!%p207_p2), %s713_s19, 1  ;;  %v820_v0 = vmov (!%p207_p2), 0   ;;  %v810_v5 = vld [vmem:[%s978_s3] sm:$0xff] (!%p207_p2)   ;;  %vm353_vm0 = vcmask (!%p207_p2), 130048   ;;  %v821_v50 = vmov (!%p207_p2), 0.0   ;;  %vm822_vm1 = vmmov (!%p207_p2), 0  }
   0x6   : > { %210 = sbr.rel (%p207_p2) target bundleno = 610 (0x262), region = 40  ;;  %808 = vset.pattern.permute.xlu0 (!%p207_p2), %v820_v0  ;;  %809 = vset.pattern.permute.xlu1 (!%p207_p2), %v820_v0  ;;  %v811_v57 = vld [vmem:[%s979_s4] sm:$0xff] (!%p207_p2)  }
   0x7   : > { %763 = vmatprep.subr.bf16.mxu0 (!%p207_p2), %v810_v5  ;;  %773 = vmatprep.subr.bf16.mxu1 (!%p207_p2), %v821_v50 }
   0x8   : > { %764 = vmatpush3.bf16.msra.mxu0 (!%p207_p2), %v810_v5  ;;  %775 = vmatprep.mubr.msk.bf16.mxu1 (!%p207_p2), %vm822_vm1, %v821_v50 }
   0x9   : > { %785 = vmatprep.subr.bf16.mxu0 (!%p207_p2), %v821_v50 }
   0xd   : > { %s982_s19 = smov (!%p243_p3, %s713_s19), 1 }
   0xe   : > { %s722_s20 = sshll.u32 %s982_s19, 2  ;;  %s748_s26 = sshll.u32 %s982_s19, 4 }
   0xf   : > { %s256_s23 = scalar_lea.vmem %s977_s2, %s722_s20  ;;  %s747_s27 = sshll.u32 %s982_s19, 6 }
  0x10   : > { %v725_v1 = vld [vmem:[%s256_s23] ss:$0 sm:$0xff]  ;;  %v727_v2 = vld [vmem:[%s256_s23 + $0x2] ss:$0 sm:$0xff]  ;;  %v726_v3 = vld [vmem:[%s256_s23 + $0x1] ss:$0 sm:$0xff]  ;;  %s252_s30 = scalar_lea.vmem %s976_s1, %s748_s26  ;;  %s247_s8 = scalar_lea.vmem %s975_s0, %s747_s27 }
  0x11   : > { %308 = vperm.xlu0 %808, %v725_v1   ;;  %316 = vperm.xlu1 %809, %v727_v2   ;;  %v728_v4 = vld [vmem:[%s256_s23 + $0x3] ss:$0 sm:$0xff]  ;;  %v882_v7 = vld [vmem:[%s252_s30 + $0x8] sm:$0xff]  ;;  %v265_v20 = vld [vmem:[%s247_s8 + $0x10] sm:$0xff]  ;;  %s939_s13 = scalar_lea.vmem %s980_s5, %s747_s27 }
  0x12   : > { %v880_v6 = vld [vmem:[%s252_s30] sm:$0xff]  ;;  %v264_v9 = vld [vmem:[%s247_s8 + $0x8] sm:$0xff]  ;;  %v286_v11 = vsub.f32 1.0, %v882_v7  ;;  %v266_v21 = vld [vmem:[%s247_s8 + $0x18] sm:$0xff] }
  0x13   : > { %v263_v8 = vld [vmem:[%s247_s8] sm:$0xff]  ;;  %v285_v10 = vsub.f32 1.0, %v880_v6  ;;  %v268_v13 = vld [vmem:[%s247_s8 + $0x28] sm:$0xff]  ;;  %v278_v15 = vmul.f32 %v882_v7, %v264_v9  ;;  %v279_v26 = vmul.f32 %v880_v6, %v265_v20  ;;  %v280_v27 = vmul.f32 %v882_v7, %v266_v21  ;;  %v269_v30 = vld [vmem:[%s247_s8 + $0x30] sm:$0xff] }
  0x14   : > { %v267_v12 = vld [vmem:[%s247_s8 + $0x20] sm:$0xff]  ;;  %v277_v14 = vmul.f32 %v880_v6, %v263_v8  ;;  %v282_v19 = vmul.f32 %v882_v7, %v268_v13  ;;  %v270_v31 = vld [vmem:[%s247_s8 + $0x38] sm:$0xff]  ;;  %v283_v39 = vmul.f32 %v880_v6, %v269_v30 }
  0x15   : > { %312 = vperm.xlu0 %808, %v726_v3   ;;  %320 = vperm.xlu1 %809, %v728_v4   ;;  %v281_v18 = vmul.f32 %v880_v6, %v267_v12  ;;  %v284_v40 = vmul.f32 %v882_v7, %v270_v31 }
  0x90   : > { %v309_v16 = vpop.permute.xlu0 %308  ;;  %v317_v17 = vpop.permute.xlu1 %316 }
  0x91   : > { %v323_v22 = vmul.f32 %v309_v16, %v285_v10  ;;  %v324_v23 = vmul.f32 %v309_v16, %v286_v11  ;;  %v327_v24 = vmul.f32 %v317_v17, %v285_v10  ;;  %v328_v25 = vmul.f32 %v317_v17, %v286_v11 }
  0x93   : > { %v892_v28 = vadd.f32 %v323_v22, %v277_v14  ;;  %v894_v29 = vadd.f32 %v324_v23, %v278_v15  ;;  %v896_v32 = vadd.f32 %v327_v24, %v281_v18  ;;  %v898_v33 = vadd.f32 %v328_v25, %v282_v19 }
  0x94   : > { %v313_v34 = vpop.permute.xlu0 %312  ;;  %v321_v35 = vpop.permute.xlu1 %320 }
  0x95   : > { %v325_v36 = vmul.f32 %v313_v34, %v285_v10  ;;  %v326_v37 = vmul.f32 %v313_v34, %v286_v11  ;;  %v339_v38 = vpack.c.bf16 %v894_v29, %v892_v28  ;;  %v329_v43 = vmul.f32 %v321_v35, %v285_v10 }
  0x96   : > { %v330_v44 = vmul.f32 %v321_v35, %v286_v11  ;;  %v341_v45 = vpack.c.bf16 %v898_v33, %v896_v32 }
  0x97   : > { %v904_v41 = vadd.f32 %v325_v36, %v279_v26  ;;  %v906_v42 = vadd.f32 %v326_v37, %v280_v27  ;;  %765 = vmatprep.mubr.msk.bf16.mxu0 %vm353_vm0, %v339_v38  ;;  %v913_v47 = vadd.f32 %v329_v43, %v283_v39 }
  0x98   : > { %v915_v48 = vadd.f32 %v330_v44, %v284_v40 }
  0x99   : > { %v340_v46 = vpack.c.bf16 %v906_v42, %v904_v41 }
  0x9a   : > { %v342_v49 = vpack.c.bf16 %v915_v48, %v913_v47 }
  0x9b   : > { %766 = vmatmul.mubr.msk.bf16.vlgmr.msra.gmra.mrb[0].mxu0 %vm353_vm0, %v340_v46 }
  0x9c   : > { %769 = vmatprep.mubr.msk.bf16.mxu0 %vm353_vm0, %v341_v45 }
  0xa3   : > { %770 = vmatmul.mubr.msk.bf16.gmra.mrb[4].mxu0 %vm353_vm0, %v342_v49 }
  0xa4   : > { %787 = vmatprep.mubr.msk.bf16.mxu0 %vm822_vm1, %v821_v50 }
 0x16e   : > { %v767_v51 = vpop.f32.mrb[0].mxu0 }
 0x16f   : > { %v400_v52 = vpop.f32.mrb[1].mxu0 }
 0x170   : > { %v768_v53 = vpop.f32.mrb[2].mxu0 }
 0x171   : > { %v487_v54 = vpack.c.bf16 %v768_v53, %v767_v51  ;;  %v403_v55 = vpop.f32.mrb[3].mxu0 }
 0x172   : > { %v431_v56 = vpack.c.bf16 %v403_v55, %v400_v52 }
 0x174   : > { %774 = vmatpush3.bf16.msra.mxu1 %v431_v56 }
 0x175   : > { %779 = vmatprep.subr.bf16.mxu1 %v821_v50 }
 0x176   : > { %v771_v58 = vpop.f32.mrb[4].mxu0 }
 0x177   : > { %v416_v59 = vpop.f32.mrb[5].mxu0  ;;  %776 = vmatmul.mubr.msk.bf16.vlgmr.msra.gmra.mrb[0].mxu1 %vm353_vm0, %v811_v57 }
 0x178   : > { %v772_v60 = vpop.f32.mrb[6].mxu0  ;;  %780 = vmatpush3.bf16.msra.mxu1 %v487_v54  ;;  %781 = vmatprep.mubr.msk.bf16.mxu1 %vm822_vm1, %v821_v50 }
 0x179   : > { %v585_v61 = vpack.c.bf16 %v772_v60, %v771_v58  ;;  %v419_v62 = vpop.f32.mrb[7].mxu0  ;;  %791 = vmatprep.subr.bf16.mxu1 %v821_v50 }
 0x17a   : > { %v536_v63 = vpack.c.bf16 %v419_v62, %v416_v59 }
 0x17c   : > { %786 = vmatpush3.bf16.msra.mxu0 %v536_v63 }
 0x17f   : > { %782 = vmatmul.mubr.msk.bf16.vlgmr.msra.gmra.mrb[4].mxu1 %vm353_vm0, %v811_v57  ;;  %788 = vmatmul.mubr.msk.bf16.vlgmr.msra.gmra.mrb[8].mxu0 %vm353_vm0, %v811_v57 }
 0x180   : > { %792 = vmatpush3.bf16.msra.mxu1 %v585_v61  ;;  %793 = vmatprep.mubr.msk.bf16.mxu1 %vm822_vm1, %v821_v50 }
 0x187   : > { %794 = vmatmul.mubr.msk.bf16.vlgmr.msra.gmra.mrb[8].mxu1 %vm353_vm0, %v811_v57 }
 0x24a   : > { %v474_v0 = vpop.f32.mrb[0].mxu1 }
 0x24b   : > { %v481_v1 = vsub.f32 %v892_v28, %v474_v0  ;;  %v777_v2 = vpop.f32.mrb[1].mxu1 }
 0x24c   : > { %v477_v3 = vpop.f32.mrb[2].mxu1 }
 0x24d   : > { %v483_v4 = vmul.f32 %v481_v1, %v880_v6  ;;  %v482_v5 = vsub.f32 %v894_v29, %v477_v3  ;;  %v778_v8 = vpop.f32.mrb[3].mxu1 }
 0x24f   : > { %485 = vst.msk [vmem:[%s939_s13] sm:$0xff] %vm353_vm0, %v483_v4  ;;  %v484_v9 = vmul.f32 %v482_v5, %v882_v7 }
 0x251   : > { %486 = vst.msk [vmem:[%s939_s13 + $0x8] sm:$0xff] %vm353_vm0, %v484_v9 }
 0x252   : > { %v522_v10 = vpop.f32.mrb[4].mxu1  ;;  %v571_v11 = vpop.f32.mrb[8].mxu0 }
 0x253   : > { %v529_v12 = vsub.f32 %v904_v41, %v522_v10  ;;  %v578_v13 = vsub.f32 %v896_v32, %v571_v11  ;;  %v783_v14 = vpop.f32.mrb[5].mxu1  ;;  %v789_v15 = vpop.f32.mrb[9].mxu0 }
 0x254   : > { %v525_v16 = vpop.f32.mrb[6].mxu1  ;;  %v574_v17 = vpop.f32.mrb[10].mxu0 }
 0x255   : > { %v531_v18 = vmul.f32 %v529_v12, %v880_v6  ;;  %v580_v19 = vmul.f32 %v578_v13, %v880_v6  ;;  %v530_v20 = vsub.f32 %v906_v42, %v525_v16  ;;  %v579_v21 = vsub.f32 %v898_v33, %v574_v17  ;;  %v784_v22 = vpop.f32.mrb[7].mxu1  ;;  %v790_v23 = vpop.f32.mrb[11].mxu0 }
 0x257   : > { %737 = vst.msk [vmem:[%s939_s13 + $0x10] sm:$0xff] %vm353_vm0, %v531_v18  ;;  %740 = vst.msk [vmem:[%s939_s13 + $0x20] sm:$0xff] %vm353_vm0, %v580_v19  ;;  %v532_v24 = vmul.f32 %v530_v20, %v882_v7  ;;  %v581_v25 = vmul.f32 %v579_v21, %v882_v7 }
 0x259   : > { %738 = vst.msk [vmem:[%s939_s13 + $0x18] sm:$0xff] %vm353_vm0, %v532_v24  ;;  %741 = vst.msk [vmem:[%s939_s13 + $0x28] sm:$0xff] %vm353_vm0, %v581_v25 }
 0x25a   : > { %v620_v26 = vpop.f32.mrb[8].mxu1 }
 0x25b   : > { %v627_v27 = vsub.f32 %v913_v47, %v620_v26  ;;  %v795_v28 = vpop.f32.mrb[9].mxu1 }
 0x25c   : > { %v623_v29 = vpop.f32.mrb[10].mxu1 }
 0x25d   : > { %v629_v30 = vmul.f32 %v627_v27, %v880_v6  ;;  %v628_v31 = vsub.f32 %v915_v48, %v623_v29  ;;  %v796_v32 = vpop.f32.mrb[11].mxu1 }
 0x25f   : > { %743 = vst.msk [vmem:[%s939_s13 + $0x30] sm:$0xff] %vm353_vm0, %v629_v30  ;;  %v630_v33 = vmul.f32 %v628_v31, %v882_v7 }
 0x261   : > { %744 = vst.msk [vmem:[%s939_s13 + $0x38] sm:$0xff] %vm353_vm0, %v630_v33 }
 0x262 PF: > { %s15_s18 = sadd.s32 1, %s818_s18  }
 0x263   : > { %p12_p4 = scmp.ge.s32.totalorder %s15_s18, 4  }
 0x265   :  { %14 = sbr.rel (!%p12_p4) target bundleno = 1 (0x1), region = 79 }

</bundles_post_ra>
